<compile_context>
chip_gen: v7x
topology: tpu7x:2x2x1
jax: 0.10.0
libtpu: 0.0.40
codegen_flags: <defaults>
</compile_context>

<pallas_src>
import jax
import jax.numpy as jnp
from jax import lax
from jax.experimental import pallas as pl
from jax.experimental.pallas import tpu as pltpu


_TARGET_LANES = 2048  # ~8 images at 16x16 per step: wide MXU N-dim / vst slab, tiny VMEM use


def _round_up(v, m):
    return ((v + m - 1) // m) * m


def _default_matmul_dtype():
    """bf16 (single MXU pass, cheap casts) on v6e/v7x; f32 on v5e & older (no bf16 VPU there)."""
    try:
        kind = jax.devices()[0].device_kind.lower()
    except Exception:
        return jnp.float32
    if any(tag in kind for tag in ("v6", "v7", "6e", "7x")):
        return jnp.bfloat16
    return jnp.float32


def _make_conv_chain_kernel(depth, ksize, H, W, b_tile, chans_p, cin_real, matmul_dtype):
    """Fused conv-chain kernel over one lane-batched tile of `b_tile` images.

    Refs: (x_ref, w1, b1, ..., wD, bD, o_ref, xcat_scratch)
      x_ref : (1, Cin,    b_tile*H*W) f32           (unpadded channels; padded in VMEM below)
      w_i   : (Cout_p, ksize*Cin_i_p) matmul_dtype  (tap-major columns)
      b_i   : (Cout_p, 1) f32
      o_ref : (1, Cout_p, b_tile*H*W) f32
      xcat  : (ksize*Cmax_p, b_tile*H*W) matmul_dtype VMEM scratch (persistent)
    """
    HW = H * W
    lanes = b_tile * HW
    half = ksize // 2
    offsets = [k - half for k in range(ksize)]  # tap k reads x[h + offset]

    def kernel(*refs):
        x_ref = refs[0]
        o_ref = refs[1 + 2 * depth]
        xcat = refs[2 + 2 * depth]
        layer_refs = refs[1:1 + 2 * depth]

        # Per-image 'same' zero-padding masks along H, hoisted out of the layer loop.
        # Lane l encodes (img, h, w) = (l // HW, (l % HW) // W, l % W); taps falling outside an
        # image's own rows are exactly the first/last |offset|*W lanes of that image, which also
        # covers the rows pltpu.roll wraps across image / tile boundaries.
        pos = lax.broadcasted_iota(jnp.int32, (1, lanes), 1) % HW
        tap_masks = []
        for d in offsets:
            if d == 0:
                tap_masks.append(None)
            elif d < 0:
                tap_masks.append((pos >= (-d) * W).astype(jnp.float32))
            else:
                tap_masks.append((pos < (H - d) * W).astype(jnp.float32))

        # First-layer activations: pad the real input channels up to the sublane-aligned count
        # once, in VMEM (the HBM copy of x stays unpadded -> no extra HBM traffic).
        y = x_ref[0]                                 # (Cin, lanes) f32
        if chans_p[0] != cin_real:
            y = jnp.concatenate(
                [y, jnp.zeros((chans_p[0] - cin_real, lanes), y.dtype)], axis=0)

        for i in range(depth):
            w_ref = layer_refs[2 * i]
            b_ref = layer_refs[2 * i + 1]
            c_in_p = chans_p[i]
            # Write the ksize h-shifted copies of y into the persistent tap scratch (tap-major
            # rows, matching the wrapper-side weight reshape).  A +-1 row step is +-W lanes;
            # pltpu.roll matches jnp.roll (out[l] = in[(l - shift) % lanes]) and takes
            # non-negative shifts, hence (-d*W) % lanes; wrapped lanes are killed by the masks.
            for k, d in enumerate(offsets):
                if d == 0:
                    piece = y
                else:
                    piece = pltpu.roll(y, shift=(-d * W) % lanes, axis=1) * tap_masks[k]
                xcat[pl.ds(k * c_in_p, c_in_p), :] = piece.astype(matmul_dtype)
            # One MXU matmul per layer; DEFAULT precision (single pass), f32 accumulation.
            acc = jnp.dot(w_ref[...], xcat[pl.ds(0, ksize * c_in_p), :],
                          preferred_element_type=jnp.float32)
            y = jnp.maximum(acc + b_ref[...], 0.0)   # (Cout_p, lanes) f32
        o_ref[0] = y

    return kernel


def cnn1d_single_chain_pallas(x, params, *, matmul_dtype=None, b_tile=None):
    """Forward pass of CNN1DSingleChain.  x: (N, Cin, H, W) NCHW float32."""
    N, Cin, H, W = x.shape
    depth = len(params)
    Cout = params[0][0].shape[0]
    ksize = params[0][0].shape[2]
    if ksize % 2 != 1:
        raise NotImplementedError("only odd kernel_size ('same' pads symmetrically)")
    if matmul_dtype is None:
        matmul_dtype = _default_matmul_dtype()
    HW = H * W

    # Images per grid step: amortize the per-step grid overhead / small DMAs while keeping the
    # grid >= 2 steps whenever N >= 2 (so both v7x TensorCores get work).  Per-step VMEM at the
    # default ~2048-lane target is < 1 MiB, far below every generation's scoped limit.
    if b_tile is None:
        b_tile = max(1, _TARGET_LANES // HW)
        if N >= 2:
            b_tile = min(b_tile, -(-N // 2))
        b_tile = max(1, min(b_tile, N))
    n_tiles = -(-N // b_tile)
    Np = n_tiles * b_tile
    lanes = b_tile * HW

    # Channel counts padded to sublane multiples (8) for aligned scratch rows / MXU tiles.
    chans = [Cin] + [w.shape[0] for (w, _) in params]
    chans_p = [_round_up(c, 8) for c in chans]

    # Input: NCHW -> (n_tiles, Cin, b_tile*HW), images lane-concatenated within a tile
    # (layout plumbing only; no channel padding in HBM).
    x3 = x.reshape(N, Cin, HW).astype(jnp.float32)
    if Np != N:
        x3 = jnp.pad(x3, ((0, Np - N), (0, 0), (0, 0)))
    xt = x3.reshape(n_tiles, b_tile, Cin, HW).transpose(0, 2, 1, 3).reshape(n_tiles, Cin, lanes)

    kernel_args = [xt]
    in_specs = [pl.BlockSpec((1, Cin, lanes), lambda n: (n, 0, 0))]
    for i, (w, b) in enumerate(params):
        c_in, c_in_p = chans[i], chans_p[i]
        c_out, c_out_p = chans[i + 1], chans_p[i + 1]
        # (Cout, Cin, K, 1) -> (Cout, K, Cin) -> zero-pad -> (Cout_p, K*Cin_p); columns are
        # tap-major, matching the scratch rows [tap0: Cin_p, tap1: Cin_p, ...] in the kernel.
        wk = jnp.transpose(w[:, :, :, 0], (0, 2, 1)).astype(jnp.float32)
        wk = jnp.pad(wk, ((0, c_out_p - c_out), (0, 0), (0, c_in_p - c_in)))
        wcat = wk.reshape(c_out_p, ksize * c_in_p).astype(matmul_dtype)
        bp = jnp.pad(b.astype(jnp.float32), (0, c_out_p - c_out)).reshape(c_out_p, 1)
        kernel_args += [wcat, bp]
        in_specs += [pl.BlockSpec((c_out_p, ksize * c_in_p), lambda n: (0, 0)),
                     pl.BlockSpec((c_out_p, 1), lambda n: (0, 0))]

    cmax_in_p = max(chans_p[:-1])
    cout_last_p = chans_p[-1]
    out = pl.pallas_call(
        _make_conv_chain_kernel(depth, ksize, H, W, b_tile, chans_p, Cin, matmul_dtype),
        out_shape=jax.ShapeDtypeStruct((n_tiles, cout_last_p, lanes), jnp.float32),
        grid=(n_tiles,),
        in_specs=in_specs,
        out_specs=pl.BlockSpec((1, cout_last_p, lanes), lambda n: (n, 0, 0)),
        scratch_shapes=[pltpu.VMEM((ksize * cmax_in_p, lanes), matmul_dtype)],
        compiler_params=pltpu.CompilerParams(
            # Image tiles are fully independent -> shard across v7x's two TensorCores.
            dimension_semantics=("parallel",),
            # Per-step footprint ~< 1 MiB; 32 MiB scoped cap is safe on v5e/v6e (128 MiB VMEM)
            # and on v7x (64 MiB VMEM).
            vmem_limit_bytes=32 * 1024 * 1024,
        ),
    )(*kernel_args)

    # (n_tiles, Cout_p, b_tile*HW) -> (N, Cout, H, W)
    out = out.reshape(n_tiles, cout_last_p, b_tile, HW).transpose(0, 2, 1, 3)
    out = out.reshape(Np, cout_last_p, H, W)
    return out[:N, :Cout]


def init_params(key, depth=3, input_filters=2, output_filters=16, kernel_size=3):
    """Deterministic PyTorch-Conv2d-style uniform init (bound = 1/sqrt(fan_in))."""
    in_f = [input_filters] + [output_filters] * (depth - 1)
    params = []
    for i in range(depth):
        key, kw, kb = jax.random.split(key, 3)
        fan_in = in_f[i] * kernel_size * 1
        bound = 1.0 / (fan_in ** 0.5)
        w = jax.random.uniform(kw, (output_filters, in_f[i], kernel_size, 1),
                               jnp.float32, -bound, bound)
        b = jax.random.uniform(kb, (output_filters,), jnp.float32, -bound, bound)
        params.append((w, b))
    return params


def reference_forward(x, params):
    """Pure-JAX f32 reference matching the PyTorch module semantics."""
    y = x
    for (w, b) in params:
        pad = w.shape[2] // 2
        y = lax.conv_general_dilated(
            y, w, window_strides=(1, 1), padding=((pad, pad), (0, 0)),
            dimension_numbers=("NCHW", "OIHW", "NCHW"),
            precision=lax.Precision.HIGHEST)
        y = jnp.maximum(y + b.reshape(1, -1, 1, 1), 0.0)
    return y


if __name__ == "__main__":
    key = jax.random.PRNGKey(0)
    kx, kp, kx2 = jax.random.split(key, 3)
    # Module defaults: depth=3, input_filters=2, output_filters=16, kernel_size=3; NCHW input.
    N, Cin, H, W = 4, 2, 16, 16
    x = jax.random.normal(kx, (N, Cin, H, W), dtype=jnp.float32)
    params = init_params(kp, depth=3, input_filters=2, output_filters=16, kernel_size=3)

    fwd = jax.jit(cnn1d_single_chain_pallas)
    out = jax.block_until_ready(fwd(x, params))
    ref = reference_forward(x, params)
    assert out.shape == ref.shape == (N, 16, H, W), (out.shape, ref.shape)
    # Single-pass MXU (DEFAULT precision / bf16 on v6e/v7x) vs an f32 HIGHEST reference:
    # tolerance loosened to 2e-2 per the review's correctness note.
    if not bool(jnp.allclose(out, ref, atol=2e-2, rtol=2e-2)):
        raise AssertionError(
            f"Pallas kernel mismatch: max|err|={float(jnp.max(jnp.abs(out - ref)))}")

    # Ragged batch (N not a multiple of the per-step image tile) exercises the batch-pad path
    # and the per-image boundary masks with >1 image per lane-concatenated tile.
    x2 = jax.random.normal(kx2, (3, Cin, H, W), dtype=jnp.float32)
    out2 = jax.block_until_ready(fwd(x2, params))
    ref2 = reference_forward(x2, params)
    if not bool(jnp.allclose(out2, ref2, atol=2e-2, rtol=2e-2)):
        raise AssertionError(
            f"Pallas kernel mismatch (ragged batch): "
            f"max|err|={float(jnp.max(jnp.abs(out2 - ref2)))}")

    print("KERNEL_OK")
</pallas_src>

<mosaic_0001>
module attributes {stable_mosaic.version = 11 : i64} {
  func.func @kernel(%arg0: i32, %arg1: memref<1x2x512xf32, #tpu.memory_space<vmem>>, %arg2: memref<16x24xf32, #tpu.memory_space<vmem>>, %arg3: memref<16x1xf32, #tpu.memory_space<vmem>>, %arg4: memref<16x48xf32, #tpu.memory_space<vmem>>, %arg5: memref<16x1xf32, #tpu.memory_space<vmem>>, %arg6: memref<16x48xf32, #tpu.memory_space<vmem>>, %arg7: memref<16x1xf32, #tpu.memory_space<vmem>>, %arg8: memref<1x16x512xf32, #tpu.memory_space<vmem>>, %arg9: memref<48x512xf32, #tpu.memory_space<vmem>>) attributes {dimension_semantics = [#tpu.dimension_semantics<parallel>], iteration_bounds = array<i64: 2>, scalar_prefetch = 0 : i64, scratch_operands = 1 : i64, tpu.core_type = #tpu.core_type<tc>, window_params = [{transform_indices = @transform_0, window_bounds = array<i64: 1, 2, 512>}, {pipeline_mode = #tpu.pipeline_mode<synchronous>, transform_indices = @transform_1, window_bounds = array<i64: 16, 24>}, {pipeline_mode = #tpu.pipeline_mode<synchronous>, transform_indices = @transform_2, window_bounds = array<i64: 16, 1>}, {pipeline_mode = #tpu.pipeline_mode<synchronous>, transform_indices = @transform_3, window_bounds = array<i64: 16, 48>}, {pipeline_mode = #tpu.pipeline_mode<synchronous>, transform_indices = @transform_4, window_bounds = array<i64: 16, 1>}, {pipeline_mode = #tpu.pipeline_mode<synchronous>, transform_indices = @transform_5, window_bounds = array<i64: 16, 48>}, {pipeline_mode = #tpu.pipeline_mode<synchronous>, transform_indices = @transform_6, window_bounds = array<i64: 16, 1>}, {transform_indices = @transform_7, window_bounds = array<i64: 1, 16, 512>}]} {
    %0 = tpu.iota {dimensions = array<i32: 1>} : vector<1x512xi32>
    %c256_i32 = arith.constant 256 : i32
    %c0_i32 = arith.constant 0 : i32
    %1 = arith.cmpi eq, %c256_i32, %c0_i32 : i32
    %c1_i32 = arith.constant 1 : i32
    %2 = arith.select %1, %c1_i32, %c256_i32 : i32
    %3 = vector.broadcast %2 : i32 to vector<1x512xi32>
    %4 = arith.remsi %0, %3 : vector<1x512xi32>
    %c0_i32_0 = arith.constant 0 : i32
    %5 = vector.broadcast %c0_i32_0 : i32 to vector<1x512xi32>
    %6 = arith.cmpi ne, %4, %5 : vector<1x512xi32>
    %c0_i32_1 = arith.constant 0 : i32
    %7 = vector.broadcast %c0_i32_1 : i32 to vector<1x512xi32>
    %8 = arith.cmpi slt, %4, %7 : vector<1x512xi32>
    %c0_i32_2 = arith.constant 0 : i32
    %9 = arith.cmpi slt, %2, %c0_i32_2 : i32
    %10 = vector.broadcast %9 : i1 to vector<1x512xi1>
    %11 = vector.broadcast %10 : vector<1x512xi1> to vector<1x512xi1>
    %12 = arith.xori %8, %11 : vector<1x512xi1>
    %13 = arith.andi %12, %6 : vector<1x512xi1>
    %14 = vector.broadcast %2 : i32 to vector<1x512xi32>
    %15 = arith.addi %4, %14 : vector<1x512xi32>
    %16 = arith.select %13, %15, %4 : vector<1x512xi1>, vector<1x512xi32>
    %c16_i32 = arith.constant 16 : i32
    %17 = vector.broadcast %c16_i32 : i32 to vector<1x512xi32>
    %18 = arith.cmpi sge, %16, %17 : vector<1x512xi32>
    %19 = arith.extui %18 : vector<1x512xi1> to vector<1x512xi32>
    %20 = arith.sitofp %19 : vector<1x512xi32> to vector<1x512xf32>
    %c240_i32 = arith.constant 240 : i32
    %21 = vector.broadcast %c240_i32 : i32 to vector<1x512xi32>
    %22 = arith.cmpi slt, %16, %21 : vector<1x512xi32>
    %23 = arith.extui %22 : vector<1x512xi1> to vector<1x512xi32>
    %24 = arith.sitofp %23 : vector<1x512xi32> to vector<1x512xf32>
    %c0 = arith.constant 0 : index
    %c0_3 = arith.constant 0 : index
    %c0_4 = arith.constant 0 : index
    %25 = vector.load %arg1[%c0, %c0_3, %c0_4] : memref<1x2x512xf32, #tpu.memory_space<vmem>>, vector<1x2x512xf32>
    %26 = vector.shape_cast %25 : vector<1x2x512xf32> to vector<2x512xf32>
    %cst = arith.constant 0.000000e+00 : f32
    %27 = vector.broadcast %cst : f32 to vector<6x512xf32>
    %28 = tpu.concatenate %26, %27 in 0 : vector<2x512xf32>, vector<6x512xf32> -> vector<8x512xf32>
    %c16_i32_5 = arith.constant 16 : i32
    %29 = tpu.dynamic_rotate %28 by %c16_i32_5 dim 1 : vector<8x512xf32>, i32 -> vector<8x512xf32>
    %30 = vector.broadcast %20 : vector<1x512xf32> to vector<8x512xf32>
    %31 = arith.mulf %29, %30 : vector<8x512xf32>
    %c0_6 = arith.constant 0 : index
    %c0_7 = arith.constant 0 : index
    %32 = vector.load %arg9[%c0_6, %c0_7] : memref<48x512xf32, #tpu.memory_space<vmem>>, vector<8x512xf32>
    tpu.vector_store %arg9[%c0_6, %c0_7], %31 {strides = array<i32>} : memref<48x512xf32, #tpu.memory_space<vmem>>, vector<8x512xf32>,
    %c8 = arith.constant 8 : index
    %c0_8 = arith.constant 0 : index
    %33 = vector.load %arg9[%c8, %c0_8] : memref<48x512xf32, #tpu.memory_space<vmem>>, vector<8x512xf32>
    tpu.vector_store %arg9[%c8, %c0_8], %28 {strides = array<i32>} : memref<48x512xf32, #tpu.memory_space<vmem>>, vector<8x512xf32>,
    %c496_i32 = arith.constant 496 : i32
    %34 = tpu.dynamic_rotate %28 by %c496_i32 dim 1 : vector<8x512xf32>, i32 -> vector<8x512xf32>
    %35 = vector.broadcast %24 : vector<1x512xf32> to vector<8x512xf32>
    %36 = arith.mulf %34, %35 : vector<8x512xf32>
    %c16 = arith.constant 16 : index
    %c0_9 = arith.constant 0 : index
    %37 = vector.load %arg9[%c16, %c0_9] : memref<48x512xf32, #tpu.memory_space<vmem>>, vector<8x512xf32>
    tpu.vector_store %arg9[%c16, %c0_9], %36 {strides = array<i32>} : memref<48x512xf32, #tpu.memory_space<vmem>>, vector<8x512xf32>,
    %c0_10 = arith.constant 0 : index
    %c0_11 = arith.constant 0 : index
    %38 = vector.load %arg2[%c0_10, %c0_11] : memref<16x24xf32, #tpu.memory_space<vmem>>, vector<16x24xf32>
    %c0_12 = arith.constant 0 : index
    %c0_13 = arith.constant 0 : index
    %39 = vector.load %arg9[%c0_12, %c0_13] : memref<48x512xf32, #tpu.memory_space<vmem>>, vector<24x512xf32>
    %cst_14 = arith.constant dense<0.000000e+00> : vector<16x512xf32>
    %40 = tpu.matmul %38, %39, %cst_14 {dimension_numbers = #tpu.dot_dimension_numbers<[1], [0], [0], [1], [0, 0, 1, 1], [], []>} : vector<16x24xf32>, vector<24x512xf32>, vector<16x512xf32> -> vector<16x512xf32>
    %c0_15 = arith.constant 0 : index
    %c0_16 = arith.constant 0 : index
    %41 = vector.load %arg3[%c0_15, %c0_16] : memref<16x1xf32, #tpu.memory_space<vmem>>, vector<16x1xf32>
    %42 = vector.broadcast %41 : vector<16x1xf32> to vector<16x512xf32>
    %43 = arith.addf %40, %42 : vector<16x512xf32>
    %cst_17 = arith.constant 0.000000e+00 : f32
    %44 = vector.broadcast %cst_17 : f32 to vector<16x512xf32>
    %45 = arith.maximumf %43, %44 : vector<16x512xf32>
    %c16_i32_18 = arith.constant 16 : i32
    %46 = tpu.dynamic_rotate %45 by %c16_i32_18 dim 1 : vector<16x512xf32>, i32 -> vector<16x512xf32>
    %47 = vector.broadcast %20 : vector<1x512xf32> to vector<16x512xf32>
    %48 = arith.mulf %46, %47 : vector<16x512xf32>
    %c0_19 = arith.constant 0 : index
    %c0_20 = arith.constant 0 : index
    %49 = vector.load %arg9[%c0_19, %c0_20] : memref<48x512xf32, #tpu.memory_space<vmem>>, vector<16x512xf32>
    tpu.vector_store %arg9[%c0_19, %c0_20], %48 {strides = array<i32>} : memref<48x512xf32, #tpu.memory_space<vmem>>, vector<16x512xf32>,
    %c16_21 = arith.constant 16 : index
    %c0_22 = arith.constant 0 : index
    %50 = vector.load %arg9[%c16_21, %c0_22] : memref<48x512xf32, #tpu.memory_space<vmem>>, vector<16x512xf32>
    tpu.vector_store %arg9[%c16_21, %c0_22], %45 {strides = array<i32>} : memref<48x512xf32, #tpu.memory_space<vmem>>, vector<16x512xf32>,
    %c496_i32_23 = arith.constant 496 : i32
    %51 = tpu.dynamic_rotate %45 by %c496_i32_23 dim 1 : vector<16x512xf32>, i32 -> vector<16x512xf32>
    %52 = vector.broadcast %24 : vector<1x512xf32> to vector<16x512xf32>
    %53 = arith.mulf %51, %52 : vector<16x512xf32>
    %c32 = arith.constant 32 : index
    %c0_24 = arith.constant 0 : index
    %54 = vector.load %arg9[%c32, %c0_24] : memref<48x512xf32, #tpu.memory_space<vmem>>, vector<16x512xf32>
    tpu.vector_store %arg9[%c32, %c0_24], %53 {strides = array<i32>} : memref<48x512xf32, #tpu.memory_space<vmem>>, vector<16x512xf32>,
    %c0_25 = arith.constant 0 : index
    %c0_26 = arith.constant 0 : index
    %55 = vector.load %arg4[%c0_25, %c0_26] : memref<16x48xf32, #tpu.memory_space<vmem>>, vector<16x48xf32>
    %c0_27 = arith.constant 0 : index
    %c0_28 = arith.constant 0 : index
    %56 = vector.load %arg9[%c0_27, %c0_28] : memref<48x512xf32, #tpu.memory_space<vmem>>, vector<48x512xf32>
    %cst_29 = arith.constant dense<0.000000e+00> : vector<16x512xf32>
    %57 = tpu.matmul %55, %56, %cst_29 {dimension_numbers = #tpu.dot_dimension_numbers<[1], [0], [0], [1], [0, 0, 1, 1], [], []>} : vector<16x48xf32>, vector<48x512xf32>, vector<16x512xf32> -> vector<16x512xf32>
    %c0_30 = arith.constant 0 : index
    %c0_31 = arith.constant 0 : index
    %58 = vector.load %arg5[%c0_30, %c0_31] : memref<16x1xf32, #tpu.memory_space<vmem>>, vector<16x1xf32>
    %59 = vector.broadcast %58 : vector<16x1xf32> to vector<16x512xf32>
    %60 = arith.addf %57, %59 : vector<16x512xf32>
    %cst_32 = arith.constant 0.000000e+00 : f32
    %61 = vector.broadcast %cst_32 : f32 to vector<16x512xf32>
    %62 = arith.maximumf %60, %61 : vector<16x512xf32>
    %c16_i32_33 = arith.constant 16 : i32
    %63 = tpu.dynamic_rotate %62 by %c16_i32_33 dim 1 : vector<16x512xf32>, i32 -> vector<16x512xf32>
    %64 = vector.broadcast %20 : vector<1x512xf32> to vector<16x512xf32>
    %65 = arith.mulf %63, %64 : vector<16x512xf32>
    %c0_34 = arith.constant 0 : index
    %c0_35 = arith.constant 0 : index
    %66 = vector.load %arg9[%c0_34, %c0_35] : memref<48x512xf32, #tpu.memory_space<vmem>>, vector<16x512xf32>
    tpu.vector_store %arg9[%c0_34, %c0_35], %65 {strides = array<i32>} : memref<48x512xf32, #tpu.memory_space<vmem>>, vector<16x512xf32>,
    %c16_36 = arith.constant 16 : index
    %c0_37 = arith.constant 0 : index
    %67 = vector.load %arg9[%c16_36, %c0_37] : memref<48x512xf32, #tpu.memory_space<vmem>>, vector<16x512xf32>
    tpu.vector_store %arg9[%c16_36, %c0_37], %62 {strides = array<i32>} : memref<48x512xf32, #tpu.memory_space<vmem>>, vector<16x512xf32>,
    %c496_i32_38 = arith.constant 496 : i32
    %68 = tpu.dynamic_rotate %62 by %c496_i32_38 dim 1 : vector<16x512xf32>, i32 -> vector<16x512xf32>
    %69 = vector.broadcast %24 : vector<1x512xf32> to vector<16x512xf32>
    %70 = arith.mulf %68, %69 : vector<16x512xf32>
    %c32_39 = arith.constant 32 : index
    %c0_40 = arith.constant 0 : index
    %71 = vector.load %arg9[%c32_39, %c0_40] : memref<48x512xf32, #tpu.memory_space<vmem>>, vector<16x512xf32>
    tpu.vector_store %arg9[%c32_39, %c0_40], %70 {strides = array<i32>} : memref<48x512xf32, #tpu.memory_space<vmem>>, vector<16x512xf32>,
    %c0_41 = arith.constant 0 : index
    %c0_42 = arith.constant 0 : index
    %72 = vector.load %arg6[%c0_41, %c0_42] : memref<16x48xf32, #tpu.memory_space<vmem>>, vector<16x48xf32>
    %c0_43 = arith.constant 0 : index
    %c0_44 = arith.constant 0 : index
    %73 = vector.load %arg9[%c0_43, %c0_44] : memref<48x512xf32, #tpu.memory_space<vmem>>, vector<48x512xf32>
    %cst_45 = arith.constant dense<0.000000e+00> : vector<16x512xf32>
    %74 = tpu.matmul %72, %73, %cst_45 {dimension_numbers = #tpu.dot_dimension_numbers<[1], [0], [0], [1], [0, 0, 1, 1], [], []>} : vector<16x48xf32>, vector<48x512xf32>, vector<16x512xf32> -> vector<16x512xf32>
    %c0_46 = arith.constant 0 : index
    %c0_47 = arith.constant 0 : index
    %75 = vector.load %arg7[%c0_46, %c0_47] : memref<16x1xf32, #tpu.memory_space<vmem>>, vector<16x1xf32>
    %76 = vector.broadcast %75 : vector<16x1xf32> to vector<16x512xf32>
    %77 = arith.addf %74, %76 : vector<16x512xf32>
    %cst_48 = arith.constant 0.000000e+00 : f32
    %78 = vector.broadcast %cst_48 : f32 to vector<16x512xf32>
    %79 = arith.maximumf %77, %78 : vector<16x512xf32>
    %c0_49 = arith.constant 0 : index
    %c0_50 = arith.constant 0 : index
    %c0_51 = arith.constant 0 : index
    %80 = vector.load %arg8[%c0_49, %c0_50, %c0_51] : memref<1x16x512xf32, #tpu.memory_space<vmem>>, vector<1x16x512xf32>
    %81 = vector.shape_cast %80 : vector<1x16x512xf32> to vector<16x512xf32>
    %82 = vector.shape_cast %79 : vector<16x512xf32> to vector<1x16x512xf32>
    tpu.vector_store %arg8[%c0_49, %c0_50, %c0_51], %82 {strides = array<i32>} : memref<1x16x512xf32, #tpu.memory_space<vmem>>, vector<1x16x512xf32>,
    return
  }
  func.func @transform_0(%arg0: i32) -> (i32, i32, i32) {
    %c0_i32 = arith.constant 0 : i32
    %c0_i32_0 = arith.constant 0 : i32
    %c0_i32_1 = arith.constant 0 : i32
    return %arg0, %c0_i32, %c0_i32_0 : i32, i32, i32
  }
  func.func @transform_1(%arg0: i32) -> (i32, i32) {
    %c0_i32 = arith.constant 0 : i32
    %c0_i32_0 = arith.constant 0 : i32
    %c0_i32_1 = arith.constant 0 : i32
    return %c0_i32, %c0_i32_0 : i32, i32
  }
  func.func @transform_2(%arg0: i32) -> (i32, i32) {
    %c0_i32 = arith.constant 0 : i32
    %c0_i32_0 = arith.constant 0 : i32
    %c0_i32_1 = arith.constant 0 : i32
    return %c0_i32, %c0_i32_0 : i32, i32
  }
  func.func @transform_3(%arg0: i32) -> (i32, i32) {
    %c0_i32 = arith.constant 0 : i32
    %c0_i32_0 = arith.constant 0 : i32
    %c0_i32_1 = arith.constant 0 : i32
    return %c0_i32, %c0_i32_0 : i32, i32
  }
  func.func @transform_4(%arg0: i32) -> (i32, i32) {
    %c0_i32 = arith.constant 0 : i32
    %c0_i32_0 = arith.constant 0 : i32
    %c0_i32_1 = arith.constant 0 : i32
    return %c0_i32, %c0_i32_0 : i32, i32
  }
  func.func @transform_5(%arg0: i32) -> (i32, i32) {
    %c0_i32 = arith.constant 0 : i32
    %c0_i32_0 = arith.constant 0 : i32
    %c0_i32_1 = arith.constant 0 : i32
    return %c0_i32, %c0_i32_0 : i32, i32
  }
  func.func @transform_6(%arg0: i32) -> (i32, i32) {
    %c0_i32 = arith.constant 0 : i32
    %c0_i32_0 = arith.constant 0 : i32
    %c0_i32_1 = arith.constant 0 : i32
    return %c0_i32, %c0_i32_0 : i32, i32
  }
  func.func @transform_7(%arg0: i32) -> (i32, i32, i32) {
    %c0_i32 = arith.constant 0 : i32
    %c0_i32_0 = arith.constant 0 : i32
    %c0_i32_1 = arith.constant 0 : i32
    return %arg0, %c0_i32, %c0_i32_0 : i32, i32, i32
  }
}

</mosaic_0001>

<bundles_post_ra>
// kernel: cnn1d_single_chain_pallas.1
= control target key start
LH: loop header
LB: loop body
LE: loop exit
PB: predicated region body
PF: predicated region fallthrough
CT: control target
= control target key end

     0   :  { %s1441_s24 = smov 0   ;;  %s1783_s0 = inlined_call_operand.vmem [shape: f32[2,2,512], index: 0, kind: input, shape index: {}]   ;;  %s1784_s1 = inlined_call_operand.vmem [shape: f32[16,24], index: 1, kind: input, shape index: {}]   ;;  %s1785_s2 = inlined_call_operand.vmem [shape: f32[16,1], index: 2, kind: input, shape index: {}]   ;;  %s1786_s3 = inlined_call_operand.vmem [shape: f32[16,48], index: 3, kind: input, shape index: {}]   ;;  %s1787_s4 = inlined_call_operand.vmem [shape: f32[16,1], index: 4, kind: input, shape index: {}]   ;;  %s1788_s5 = inlined_call_operand.vmem [shape: f32[16,48], index: 5, kind: input, shape index: {}]   ;;  %s1789_s6 = inlined_call_operand.vmem [shape: f32[16,1], index: 6, kind: input, shape index: {}]   ;;  %s1790_s7 = inlined_call_operand.vmem [shape: f32[2,16,512], index: 7, kind: output, shape index: {}]  }
   0x1 LB: > { %s1277_s25 = sadd.s32 4294967295, %s1393_s24   ;;  %p1281_p0 = scmp.ge.s32.totalorder %s1393_s24, 1  ;;  %s1393_s24 = sphi %s1441_s24, %s17_s24  }
   0x2   : > { %p237_p1 = scmp.lt.s32.totalorder %s1393_s24, 3 }
   0x4   : > { %p238_p2 = pnand %p1281_p0, %p237_p1 }
   0x5   : > { %p269_p3 = scmp.lt.s32.totalorder (!%p238_p2), %s1277_s25, 1  ;;  %v279_v0 = vlaneseq (!%p238_p2)  ;;  %v1395_v1 = vmov (!%p238_p2), 1983009808   ;;  %v1396_v3 = vmov (!%p238_p2), 0.0   ;;  %vm379_vm0 = vcmask (!%p238_p2), 1041408   ;;  %s1397_s30 = smov (!%p238_p2), 16  }
   0x6   : > { %241 = sbr.rel (%p238_p2) target bundleno = 1118 (0x45e), region = 48  ;;  %v360_v2 = vunpack.c.l.s4 (!%p238_p2), %v1395_v1  ;;  %527 = vmatprep.mubr.f32.mxu0 (!%p238_p2), %v1396_v3  ;;  %604 = vmatprep.mubr.f32.mxu1 (!%p238_p2), %v1396_v3  ;;  %s1398_s8 = smov (!%p238_p2), 112   ;;  %v1399_v17 = vmov (!%p238_p2), 0   ;;  %v444_v18 = vld [vmem:[%s1785_s2] sm:$0xff] (!%p238_p2)  ;;  %v445_v19 = vld [vmem:[%s1785_s2 + $0x8] sm:$0xff] (!%p238_p2)  ;;  %vm1400_vm4 = vmmov (!%p238_p2), 1  }
   0x7   : > { %v363_v4 = vshrl.u32 (!%p238_p2), %v279_v0, 7  ;;  %1384 = vset.pattern.permute.xlu0 (!%p238_p2), %v1399_v17  ;;  %1385 = vset.pattern.permute.xlu1 (!%p238_p2), %v1399_v17  ;;  %v1480_v20 = vand.u32 (!%p238_p2), 127, %v279_v0  ;;  %vm1498_vm5 = vmpackc.low (!%p238_p2), %vm379_vm0, %vm1400_vm4  ;;  %v430_v54 = vld [vmem:[%s1784_s1] sm:$0xff] (!%p238_p2)  ;;  %vm456_vm9 = vcmask (!%p238_p2), 195584   ;;  %v431_v58 = vld [vmem:[%s1784_s1 + $0x8] sm:$0xff] (!%p238_p2)  ;;  %vm751_vm10 = vcmask (!%p238_p2), 392192  }
   0x8   : > { %v361_v5 = vunpack.c.0.s8 (!%p238_p2), %v360_v2 }
   0x9   : > { %v282_v21 = vadd.s32 (!%p238_p2), 256, %v1480_v20  ;;  %v288_v23 = vand.u32 (!%p238_p2), 255, %v1480_v20  ;;  %v281_v25 = vadd.s32 (!%p238_p2), 128, %v1480_v20  ;;  %vm392_vm2 = vcmp.lt.s32.totalorder (!%p238_p2), %v1480_v20, 16 }
   0xa   : > { %v364_v6 = vsub.s32 (!%p238_p2), %v361_v5, %v363_v4  ;;  %v283_v27 = vadd.s32 (!%p238_p2), 384, %v1480_v20  ;;  %vm417_vm8 = vcmp.lt.s32.totalorder (!%p238_p2), %v1480_v20, 112  ;;  %v1009_v20 = vld [vmem:[%s1788_s5 + $0x8] sm:$0xff] (!%p238_p2) }
   0xb   : > { %v302_v22 = vand.u32 (!%p238_p2), 255, %v282_v21  ;;  %vm332_vm3 = vcmp.ge.s32.totalorder (!%p238_p2), %v288_v23, 16  ;;  %v295_v30 = vand.u32 (!%p238_p2), 255, %v281_v25 }
   0xc   : > { %v1495_v33 = vsel (!%p238_p2), %vm332_vm3, 1.0, %v1396_v3  ;;  %v309_v38 = vand.u32 (!%p238_p2), 255, %v283_v27  ;;  %v739_v27 = vld [vmem:[%s1787_s4] sm:$0xff] (!%p238_p2) }
   0xd   : > { %s1794_s25 = smov (!%p269_p3, %s1277_s25), 1  ;;  %vm334_vm1 = vcmp.ge.s32.totalorder %v302_v22, 16  ;;  %vm345_vm6 = vcmp.lt.s32.totalorder %v295_v30, 240 }
   0xe   : > { %s1304_s26 = sshll.u32 %s1794_s25, 3  ;;  %v1488_v28 = vsel %vm334_vm1, 1.0, %v1396_v3  ;;  %vm347_vm7 = vcmp.lt.s32.totalorder %v309_v38, 240  ;;  %v1516_v47 = vsel %vm345_vm6, 1.0, %v1396_v3  ;;  %s1305_s12 = sshll.u32 %s1794_s25, 6 }
   0xf   : > { %s273_s29 = scalar_lea.vmem %s1783_s0, %s1304_s26  ;;  %v1524_v50 = vsel %vm347_vm7, 1.0, %v1396_v3  ;;  %s278_s15 = scalar_lea.vmem %s1790_s7, %s1305_s12 }
  0x10   : > { %v356_v7 = vld [vmem:[%s273_s29] sm:$0xff] }
  0x11   : > { %v1457_v8 = vrot.slane %v356_v7, %v364_v6  ;;  %v358_v9 = vcombine.high %v356_v7, %v356_v7 }
  0x13   : > { %v380_v10 = vsel %vm379_vm0, %v1457_v8, 0.0  ;;  %v372_v11 = vrot.slane %v358_v9, %v364_v6  ;;  %v373_v12 = vcombine.high %v1457_v8, %v1457_v8 }
  0x14   : > { %384 = vrot.lane.b32.xlu0 %v380_v10, %s1397_s30 }
  0x15   : > { %v382_v13 = vsel %vm379_vm0, %v372_v11, 0.0  ;;  %v381_v14 = vsel %vm379_vm0, %v373_v12, 0.0  ;;  %v374_v15 = vcombine.high %v372_v11, %v372_v11 }
  0x16   : > { %388 = vrot.lane.b32.xlu1 %v382_v13, %s1397_s30 }
  0x17   : > { %v383_v16 = vsel %vm379_vm0, %v374_v15, 0.0 }
  0x18   : > { %386 = vrot.lane.b32.xlu0 %v381_v14, %s1397_s30 }
  0x1a   : > { %390 = vrot.lane.b32.xlu1 %v383_v16, %s1397_s30 }
  0x1c   : > { %409 = vrot.lane.b32.xlu0 %v380_v10, %s1398_s8 }
  0x1e   : > { %411 = vrot.lane.b32.xlu1 %v381_v14, %s1398_s8 }
  0x20   : > { %413 = vrot.lane.b32.xlu0 %v382_v13, %s1398_s8 }
  0x22   : > { %415 = vrot.lane.b32.xlu1 %v383_v16, %s1398_s8 }
  0x24   : > { %448 = vperm.xlu0 %1384, %v444_v18  }
  0x26   : > { %453 = vperm.xlu1 %1385, %v445_v19  }
  0x86   : > { %v385_v24 = vpop.permute.xlu0 %384 }
  0x88   : > { %v389_v26 = vpop.permute.xlu1 %388 }
  0x8a   : > { %v387_v29 = vpop.permute.xlu0 %386 }
  0x8b   : > { %v394_v31 = vsel %vm392_vm2, %v387_v29, %v389_v26  ;;  %v395_v32 = vsel %vm392_vm2, %v385_v24, %v387_v29  ;;  %v740_v29 = vld [vmem:[%s1787_s4 + $0x8] sm:$0xff] }
  0x8c   : > { %v399_v35 = vmul.f32 %v1488_v28, %v394_v31  ;;  %v391_v36 = vpop.permute.xlu1 %390  ;;  %v1310_v37 = vpack.c.bf16 %v373_v12, %v395_v32 }
  0x8d   : > { %v393_v39 = vsel %vm392_vm2, %v389_v26, %v391_v36  ;;  %v396_v40 = vsel %vm392_vm2, %v391_v36, %v385_v24 }
  0x8e   : > { %v397_v41 = vmul.f32 %v1495_v33, %v396_v40  ;;  %v410_v42 = vpop.permute.xlu0 %409  ;;  %1312 = vmatprep.subr.msk.bf16.mxu0 %vm1498_vm5, %v1310_v37  ;;  %v1316_v43 = vpack.c.bf16 %v374_v15, %v393_v39  ;;  %v1319_v44 = vpack.c.bf16 %v372_v11, %v399_v35 }
  0x90   : > { %1318 = vmatprep.subr.msk.bf16.mxu1 %vm1498_vm5, %v1316_v43  ;;  %v412_v45 = vpop.permute.xlu1 %411  ;;  %v1313_v46 = vpack.c.bf16 %v1457_v8, %v397_v41 }
  0x91   : > { %1321 = vmatpush1.bf16.msk.msra.mxu1 %vm1498_vm5, %v1319_v44  ;;  %v420_v56 = vsel %vm417_vm8, %v410_v42, %v412_v45 }
  0x92   : > { %v414_v48 = vpop.permute.xlu0 %413  ;;  %1315 = vmatpush1.bf16.msk.msra.mxu0 %vm1498_vm5, %v1313_v46 }
  0x93   : > { %v419_v49 = vsel %vm417_vm8, %v412_v45, %v414_v48 }
  0x94   : > { %v423_v51 = vmul.f32 %v1516_v47, %v419_v49  ;;  %v416_v52 = vpop.permute.xlu1 %415 }
  0x95   : > { %v421_v53 = vsel %vm417_vm8, %v416_v52, %v410_v42  ;;  %v418_v57 = vsel %vm417_vm8, %v414_v48, %v416_v52 }
  0x96   : > { %v425_v55 = vmul.f32 %v1524_v50, %v421_v53  ;;  %467 = vmatprep.subr.mxu0 %v423_v51 }
  0x97   : > { %468 = vmatpush1.msra.mxu0 %v420_v56 }
  0x98   : > { %544 = vmatprep.subr.mxu1 %v425_v55  ;;  %1290 = vmatmul.mubr.msk.f32.vlgmr.msra.gmra.mrb[0].mxu0 %vm456_vm9, %v430_v54 }
  0x99   : > { %545 = vmatpush1.msra.mxu1 %v418_v57  ;;  %533 = vmatprep.mubr.f32.mxu0 %v1396_v3 }
  0x9a   : > { %1292 = vmatmul.mubr.msk.f32.vlgmr.msra.gmra.mrb[0].mxu1 %vm456_vm9, %v430_v54 }
  0x9b   : > { %610 = vmatprep.mubr.f32.mxu1 %v1396_v3 }
  0x9c   : > { %1291 = vmatmul.mubr.msk.f32.gmra.mrb[2].mxu0 %vm456_vm9, %v431_v58 }
  0x9d   : > { %822 = vmatprep.mubr.f32.mxu0 %v1396_v3 }
  0x9e   : > { %1293 = vmatmul.mubr.msk.f32.gmra.mrb[2].mxu1 %vm456_vm9, %v431_v58 }
  0x9f   : > { %899 = vmatprep.mubr.f32.mxu1 %v1396_v3 }
  0xa3   : > { %v449_v59 = vpop.permute.xlu0 %448 }
  0xa5   : > { %v454_v1 = vpop.permute.xlu1 %453 }
 0x16b   : > { %v529_v60 = vpop.f32.mrb[0].mxu0 }
 0x16c   : > { %v530_v61 = vadd.f32 %v529_v60, %v449_v59  ;;  %v531_v62 = vpop.f32.mrb[1].mxu0 }
 0x16d   : > { %v606_v63 = vpop.f32.mrb[0].mxu1  ;;  %v532_v0 = vadd.f32 %v531_v62, %v449_v59 }
 0x16e   : > { %v607_v2 = vadd.f32 %v606_v63, %v449_v59  ;;  %v608_v4 = vpop.f32.mrb[1].mxu1  ;;  %v1546_v7 = vmax.f32 %v530_v61, 0.0 }
 0x16f   : > { %v535_v5 = vpop.f32.mrb[2].mxu0  ;;  %v609_v10 = vadd.f32 %v608_v4, %v449_v59  ;;  %v1548_v11 = vmax.f32 %v532_v0, 0.0 }
 0x170   : > { %v1544_v6 = vmax.f32 %v607_v2, 0.0  ;;  %v537_v8 = vpop.f32.mrb[3].mxu0  ;;  %v536_v9 = vadd.f32 %v535_v5, %v454_v1 }
 0x171   : > { %v612_v12 = vpop.f32.mrb[2].mxu1  ;;  %v538_v13 = vadd.f32 %v537_v8, %v454_v1  ;;  %v1560_v22 = vmax.f32 %v609_v10, 0.0 }
 0x172   : > { %v614_v14 = vpop.f32.mrb[3].mxu1  ;;  %633 = vrot.lane.b32.xlu1 %v1544_v6, %s1397_s30  ;;  %v613_v15 = vadd.f32 %v612_v12, %v454_v1  ;;  %v1552_v16 = vmax.f32 %v536_v9, 0.0 }
 0x173   : > { %v615_v17 = vadd.f32 %v614_v14, %v454_v1  ;;  %v1554_v18 = vmax.f32 %v538_v13, 0.0 }
 0x174   : > { %v1556_v19 = vmax.f32 %v613_v15, 0.0  ;;  %v1328_v21 = vpack.c.bf16 %v1552_v16, %v1546_v7 }
 0x175   : > { %v1562_v23 = vmax.f32 %v615_v17, 0.0  ;;  %v1326_v24 = vpack.c.bf16 %v1554_v18, %v1548_v11 }
 0x176   : > { %681 = vrot.lane.b32.xlu1 %v1544_v6, %s1398_s8  ;;  %635 = vrot.lane.b32.xlu0 %v1556_v19, %s1397_s30  ;;  %v1340_v25 = vpack.c.bf16 %v1556_v19, %v1544_v6  ;;  %v714_v6 = vld [vmem:[%s1786_s3 + $0x8] sm:$0xff] }
 0x177   : > { %v1338_v26 = vpack.c.bf16 %v1562_v23, %v1560_v22 }
 0x17a   : > { %625 = vrot.lane.b32.xlu1 %v1546_v7, %s1397_s30  ;;  %683 = vrot.lane.b32.xlu0 %v1556_v19, %s1398_s8 }
 0x17e   : > { %637 = vrot.lane.b32.xlu1 %v1560_v22, %s1397_s30  ;;  %627 = vrot.lane.b32.xlu0 %v1552_v16, %s1397_s30 }
 0x182   : > { %673 = vrot.lane.b32.xlu1 %v1546_v7, %s1398_s8  ;;  %639 = vrot.lane.b32.xlu0 %v1562_v23, %s1397_s30  ;;  %v713_v7 = vld [vmem:[%s1786_s3] sm:$0xff] }
 0x186   : > { %629 = vrot.lane.b32.xlu1 %v1548_v11, %s1397_s30  ;;  %675 = vrot.lane.b32.xlu0 %v1552_v16, %s1398_s8 }
 0x18a   : > { %677 = vrot.lane.b32.xlu1 %v1548_v11, %s1398_s8  ;;  %631 = vrot.lane.b32.xlu0 %v1554_v18, %s1397_s30 }
 0x18e   : > { %685 = vrot.lane.b32.xlu1 %v1560_v22, %s1398_s8  ;;  %679 = vrot.lane.b32.xlu0 %v1554_v18, %s1398_s8 }
 0x192   : > { %743 = vperm.xlu1 %1385, %v739_v27   ;;  %687 = vrot.lane.b32.xlu0 %v1562_v23, %s1398_s8 }
 0x196   : > { %748 = vperm.xlu0 %1384, %v740_v29  }
 0x1e4   : > { %v634_v30 = vpop.permute.xlu1 %633 }
 0x1e8   : > { %v636_v31 = vpop.permute.xlu0 %635  ;;  %v682_v32 = vpop.permute.xlu1 %681 }
 0x1ec   : > { %v684_v34 = vpop.permute.xlu0 %683  ;;  %v626_v35 = vpop.permute.xlu1 %625 }
 0x1f0   : > { %v628_v36 = vpop.permute.xlu0 %627  ;;  %v638_v37 = vpop.permute.xlu1 %637 }
 0x1f1   : > { %v641_v40 = vsel %vm392_vm2, %v634_v30, %v638_v37  ;;  %v647_v46 = vsel %vm392_vm2, %v638_v37, %v626_v35 }
 0x1f2   : > { %v649_v53 = vmul.f32 %v1495_v33, %v647_v46 }
 0x1f4   : > { %v640_v38 = vpop.permute.xlu0 %639  ;;  %v674_v39 = vpop.permute.xlu1 %673 }
 0x1f5   : > { %v642_v41 = vsel %vm392_vm2, %v636_v31, %v640_v38  ;;  %v648_v43 = vsel %vm392_vm2, %v640_v38, %v628_v36 }
 0x1f6   : > { %v1334_v42 = vpack.c.bf16 %v642_v41, %v641_v40  ;;  %v653_v48 = vmul.f32 %v1495_v33, %v648_v43 }
 0x1f8   : > { %v676_v44 = vpop.permute.xlu0 %675  ;;  %1335 = vmatprep.subr.bf16.mxu1 %v1334_v42  ;;  %v630_v45 = vpop.permute.xlu1 %629  ;;  %v1324_v60 = vpack.c.bf16 %v653_v48, %v649_v53 }
 0x1f9   : > { %v643_v49 = vsel %vm392_vm2, %v630_v45, %v634_v30  ;;  %v645_v54 = vsel %vm392_vm2, %v626_v35, %v630_v45 }
 0x1fa   : > { %v651_v57 = vmul.f32 %v1488_v28, %v643_v49 }
 0x1fc   : > { %v632_v51 = vpop.permute.xlu0 %631  ;;  %v678_v52 = vpop.permute.xlu1 %677 }
 0x1fd   : > { %v644_v55 = vsel %vm392_vm2, %v632_v51, %v636_v31  ;;  %v646_v56 = vsel %vm392_vm2, %v628_v36, %v632_v51  ;;  %v691_v61 = vsel %vm417_vm8, %v678_v52, %v682_v32  ;;  %v693_v11 = vsel %vm417_vm8, %v674_v39, %v678_v52 }
 0x1fe   : > { %v655_v58 = vmul.f32 %v1488_v28, %v644_v55  ;;  %v1322_v59 = vpack.c.bf16 %v646_v56, %v645_v54  ;;  %v698_v2 = vmul.f32 %v1516_v47, %v691_v61  ;;  %v1034_v55 = vld [vmem:[%s1789_s6] sm:$0xff]  ;;  %v1035_v56 = vld [vmem:[%s1789_s6 + $0x8] sm:$0xff] }
 0x200   : > { %v1336_v62 = vpack.c.bf16 %v655_v58, %v651_v57  ;;  %v680_v63 = vpop.permute.xlu0 %679  ;;  %1323 = vmatprep.subr.bf16.mxu0 %v1322_v59  ;;  %v686_v0 = vpop.permute.xlu1 %685 }
 0x201   : > { %v692_v1 = vsel %vm417_vm8, %v680_v63, %v684_v34  ;;  %1325 = vmatpush1.bf16.msra.mxu0 %v1324_v60  ;;  %v695_v5 = vsel %vm417_vm8, %v686_v0, %v674_v39  ;;  %v694_v8 = vsel %vm417_vm8, %v676_v44, %v680_v63  ;;  %v689_v18 = vsel %vm417_vm8, %v682_v32, %v686_v0 }
 0x202   : > { %v702_v4 = vmul.f32 %v1516_v47, %v692_v1  ;;  %1327 = vmatprep.subr.bf16.mxu0 %v1326_v24  ;;  %1337 = vmatpush1.bf16.msra.mxu1 %v1336_v62  ;;  %v700_v13 = vmul.f32 %v1524_v50, %v695_v5  ;;  %v1332_v17 = vpack.c.bf16 %v694_v8, %v693_v11 }
 0x203   : > { %1339 = vmatprep.subr.bf16.mxu1 %v1338_v26 }
 0x204   : > { %v688_v9 = vpop.permute.xlu0 %687  ;;  %v1330_v10 = vpack.c.bf16 %v702_v4, %v698_v2 }
 0x205   : > { %v696_v12 = vsel %vm417_vm8, %v688_v9, %v676_v44  ;;  %1329 = vmatpush1.bf16.msra.mxu0 %v1328_v21  ;;  %v690_v14 = vsel %vm417_vm8, %v684_v34, %v688_v9 }
 0x206   : > { %v704_v15 = vmul.f32 %v1524_v50, %v696_v12  ;;  %1331 = vmatprep.subr.bf16.mxu0 %v1330_v10  ;;  %1341 = vmatpush1.bf16.msra.mxu1 %v1340_v25  ;;  %v1344_v23 = vpack.c.bf16 %v690_v14, %v689_v18 }
 0x208   : > { %v1342_v22 = vpack.c.bf16 %v704_v15, %v700_v13 }
 0x209   : > { %1333 = vmatpush1.bf16.msra.mxu0 %v1332_v17 }
 0x20a   : > { %1343 = vmatprep.subr.bf16.mxu1 %v1342_v22 }
 0x20b   : > { %1345 = vmatpush1.bf16.msra.mxu1 %v1344_v23 }
 0x20c   : > { %1294 = vmatmul.mubr.msk.f32.vlgmr.msra.gmra.mrb[4].mxu0 %vm751_vm10, %v713_v7 }
 0x20d   : > { %828 = vmatprep.mubr.f32.mxu0 %v1396_v3 }
 0x20e   : > { %1296 = vmatmul.mubr.msk.f32.vlgmr.msra.gmra.mrb[4].mxu1 %vm751_vm10, %v713_v7 }
 0x20f   : > { %905 = vmatprep.mubr.f32.mxu1 %v1396_v3 }
 0x210   : > { %1295 = vmatmul.mubr.msk.f32.gmra.mrb[6].mxu0 %vm751_vm10, %v714_v6 }
 0x211   : > { %1116 = vmatprep.mubr.f32.mxu0 %v1396_v3  ;;  %v744_v16 = vpop.permute.xlu1 %743 }
 0x212   : > { %1297 = vmatmul.mubr.msk.f32.gmra.mrb[6].mxu1 %vm751_vm10, %v714_v6 }
 0x213   : > { %1193 = vmatprep.mubr.f32.mxu1 %v1396_v3 }
 0x215   : > { %v749_v29 = vpop.permute.xlu0 %748 }
 0x2df   : > { %v824_v19 = vpop.f32.mrb[4].mxu0 }
 0x2e0   : > { %v825_v21 = vadd.f32 %v824_v19, %v744_v16  ;;  %v826_v24 = vpop.f32.mrb[5].mxu0 }
 0x2e1   : > { %v901_v25 = vpop.f32.mrb[4].mxu1  ;;  %v827_v30 = vadd.f32 %v826_v24, %v744_v16 }
 0x2e2   : > { %v1666_v26 = vmax.f32 %v825_v21, 0.0  ;;  %v903_v27 = vpop.f32.mrb[5].mxu1  ;;  %v902_v32 = vadd.f32 %v901_v25, %v744_v16 }
 0x2e3   : > { %v830_v31 = vpop.f32.mrb[6].mxu0  ;;  %v904_v36 = vadd.f32 %v903_v27, %v744_v16  ;;  %v1672_v42 = vmax.f32 %v827_v30, 0.0 }
 0x2e4   : > { %v831_v34 = vadd.f32 %v830_v31, %v749_v29  ;;  %v832_v35 = vpop.f32.mrb[7].mxu0  ;;  %920 = vrot.lane.b32.xlu1 %v1666_v26, %s1397_s30  ;;  %v1676_v45 = vmax.f32 %v902_v32, 0.0 }
 0x2e5   : > { %v833_v37 = vadd.f32 %v832_v35, %v749_v29  ;;  %v907_v38 = vpop.f32.mrb[6].mxu1  ;;  %v915_v49 = vmax.f32 %v904_v36, 0.0 }
 0x2e6   : > { %v1670_v39 = vmax.f32 %v831_v34, 0.0  ;;  %v908_v40 = vadd.f32 %v907_v38, %v749_v29  ;;  %v909_v41 = vpop.f32.mrb[7].mxu1 }
 0x2e7   : > { %v1674_v43 = vmax.f32 %v833_v37, 0.0  ;;  %v910_v44 = vadd.f32 %v909_v41, %v749_v29 }
 0x2e8   : > { %v1352_v46 = vpack.c.bf16 %v1670_v39, %v1666_v26  ;;  %v1680_v48 = vmax.f32 %v908_v40, 0.0  ;;  %922 = vrot.lane.b32.xlu0 %v1670_v39, %s1397_s30  ;;  %968 = vrot.lane.b32.xlu1 %v1666_v26, %s1398_s8 }
 0x2e9   : > { %v919_v51 = vmax.f32 %v910_v44, 0.0  ;;  %v1350_v52 = vpack.c.bf16 %v1674_v43, %v1672_v42 }
 0x2ea   : > { %v1364_v53 = vpack.c.bf16 %v1680_v48, %v1676_v45 }
 0x2eb   : > { %v1362_v54 = vpack.c.bf16 %v919_v51, %v915_v49 }
 0x2ec   : > { %970 = vrot.lane.b32.xlu0 %v1670_v39, %s1398_s8  ;;  %924 = vrot.lane.b32.xlu1 %v1672_v42, %s1397_s30 }
 0x2f0   : > { %926 = vrot.lane.b32.xlu0 %v1674_v43, %s1397_s30  ;;  %928 = vrot.lane.b32.xlu1 %v1676_v45, %s1397_s30 }
 0x2f4   : > { %930 = vrot.lane.b32.xlu0 %v1680_v48, %s1397_s30  ;;  %972 = vrot.lane.b32.xlu1 %v1672_v42, %s1398_s8 }
 0x2f8   : > { %974 = vrot.lane.b32.xlu0 %v1674_v43, %s1398_s8  ;;  %932 = vrot.lane.b32.xlu1 %v915_v49, %s1397_s30 }
 0x2fc   : > { %934 = vrot.lane.b32.xlu0 %v919_v51, %s1397_s30  ;;  %976 = vrot.lane.b32.xlu1 %v1676_v45, %s1398_s8 }
 0x300   : > { %978 = vrot.lane.b32.xlu0 %v1680_v48, %s1398_s8  ;;  %980 = vrot.lane.b32.xlu1 %v915_v49, %s1398_s8 }
 0x304   : > { %982 = vrot.lane.b32.xlu0 %v919_v51, %s1398_s8  ;;  %1038 = vperm.xlu1 %1385, %v1034_v55  }
 0x308   : > { %1043 = vperm.xlu0 %1384, %v1035_v56  }
 0x356   : > { %v921_v57 = vpop.permute.xlu1 %920 }
 0x35a   : > { %v923_v58 = vpop.permute.xlu0 %922  ;;  %v969_v59 = vpop.permute.xlu1 %968 }
 0x35e   : > { %v971_v60 = vpop.permute.xlu0 %970  ;;  %v925_v61 = vpop.permute.xlu1 %924 }
 0x35f   : > { %v940_v0 = vsel %vm392_vm2, %v921_v57, %v925_v61 }
 0x362   : > { %v927_v62 = vpop.permute.xlu0 %926  ;;  %v929_v63 = vpop.permute.xlu1 %928 }
 0x363   : > { %v941_v1 = vsel %vm392_vm2, %v923_v58, %v927_v62  ;;  %v938_v11 = vsel %vm392_vm2, %v925_v61, %v929_v63 }
 0x364   : > { %v1346_v2 = vpack.c.bf16 %v941_v1, %v940_v0  ;;  %v946_v17 = vmul.f32 %v1488_v28, %v938_v11 }
 0x366   : > { %v931_v4 = vpop.permute.xlu0 %930  ;;  %1347 = vmatprep.subr.bf16.mxu0 %v1346_v2  ;;  %v973_v5 = vpop.permute.xlu1 %972 }
 0x367   : > { %v939_v8 = vsel %vm392_vm2, %v927_v62, %v931_v4  ;;  %v988_v38 = vsel %vm417_vm8, %v969_v59, %v973_v5 }
 0x368   : > { %v950_v12 = vmul.f32 %v1488_v28, %v939_v8 }
 0x36a   : > { %v975_v9 = vpop.permute.xlu0 %974  ;;  %v933_v10 = vpop.permute.xlu1 %932  ;;  %v1360_v19 = vpack.c.bf16 %v950_v12, %v946_v17 }
 0x36b   : > { %v942_v13 = vsel %vm392_vm2, %v933_v10, %v921_v57  ;;  %v936_v18 = vsel %vm392_vm2, %v929_v63, %v933_v10  ;;  %v989_v34 = vsel %vm417_vm8, %v971_v60, %v975_v9 }
 0x36c   : > { %v944_v7 = vmul.f32 %v1495_v33, %v942_v13  ;;  %v1356_v40 = vpack.c.bf16 %v989_v34, %v988_v38 }
 0x36e   : > { %v935_v14 = vpop.permute.xlu0 %934  ;;  %v977_v15 = vpop.permute.xlu1 %976 }
 0x36f   : > { %v937_v22 = vsel %vm392_vm2, %v931_v4, %v935_v14  ;;  %v943_v23 = vsel %vm392_vm2, %v935_v14, %v923_v58  ;;  %v986_v21 = vsel %vm417_vm8, %v973_v5, %v977_v15 }
 0x370   : > { %v948_v6 = vmul.f32 %v1495_v33, %v943_v23  ;;  %v1358_v16 = vpack.c.bf16 %v937_v22, %v936_v18  ;;  %v993_v29 = vmul.f32 %v1516_v47, %v986_v21 }
 0x372   : > { %v1348_v24 = vpack.c.bf16 %v948_v6, %v944_v7  ;;  %v979_v28 = vpop.permute.xlu0 %978  ;;  %1359 = vmatprep.subr.bf16.mxu1 %v1358_v16  ;;  %v981_v25 = vpop.permute.xlu1 %980 }
 0x373   : > { %v987_v27 = vsel %vm417_vm8, %v975_v9, %v979_v28  ;;  %1361 = vmatpush1.bf16.msra.mxu1 %v1360_v19  ;;  %v990_v33 = vsel %vm417_vm8, %v981_v25, %v969_v59  ;;  %v984_v41 = vsel %vm417_vm8, %v977_v15, %v981_v25 }
 0x374   : > { %v997_v30 = vmul.f32 %v1516_v47, %v987_v27  ;;  %1349 = vmatpush1.bf16.msra.mxu0 %v1348_v24  ;;  %1363 = vmatprep.subr.bf16.mxu1 %v1362_v54  ;;  %v995_v47 = vmul.f32 %v1524_v50, %v990_v33 }
 0x375   : > { %1351 = vmatprep.subr.bf16.mxu0 %v1350_v52 }
 0x376   : > { %v983_v31 = vpop.permute.xlu0 %982  ;;  %v1354_v32 = vpack.c.bf16 %v997_v30, %v993_v29 }
 0x377   : > { %v991_v35 = vsel %vm417_vm8, %v983_v31, %v971_v60  ;;  %1365 = vmatpush1.bf16.msra.mxu1 %v1364_v53  ;;  %v985_v36 = vsel %vm417_vm8, %v979_v28, %v983_v31 }
 0x378   : > { %v999_v37 = vmul.f32 %v1524_v50, %v991_v35  ;;  %1353 = vmatpush1.bf16.msra.mxu0 %v1352_v46  ;;  %v1368_v43 = vpack.c.bf16 %v985_v36, %v984_v41  ;;  %v1008_v50 = vld [vmem:[%s1788_s5] sm:$0xff] }
 0x379   : > { %1355 = vmatprep.subr.bf16.mxu0 %v1354_v32 }
 0x37a   : > { %v1366_v42 = vpack.c.bf16 %v999_v37, %v995_v47 }
 0x37c   : > { %1357 = vmatpush1.bf16.msra.mxu0 %v1356_v40  ;;  %1367 = vmatprep.subr.bf16.mxu1 %v1366_v42 }
 0x37d   : > { %1369 = vmatpush1.bf16.msra.mxu1 %v1368_v43 }
 0x37f   : > { %1298 = vmatmul.mubr.msk.f32.vlgmr.msra.gmra.mrb[8].mxu0 %vm751_vm10, %v1008_v50 }
 0x380   : > { %1300 = vmatmul.mubr.msk.f32.vlgmr.msra.gmra.mrb[8].mxu1 %vm751_vm10, %v1008_v50  ;;  %1122 = vmatprep.mubr.f32.mxu0 %v1396_v3 }
 0x381   : > { %1199 = vmatprep.mubr.f32.mxu1 %v1396_v3 }
 0x383   : > { %1299 = vmatmul.mubr.msk.f32.gmra.mrb[10].mxu0 %vm751_vm10, %v1009_v20  ;;  %v1039_v26 = vpop.permute.xlu1 %1038 }
 0x384   : > { %1301 = vmatmul.mubr.msk.f32.gmra.mrb[10].mxu1 %vm751_vm10, %v1009_v20 }
 0x387   : > { %v1044_v3 = vpop.permute.xlu0 %1043 }
 0x452   : > { %v1118_v39 = vpop.f32.mrb[8].mxu0 }
 0x453   : > { %v1119_v44 = vadd.f32 %v1118_v39, %v1039_v26  ;;  %v1120_v45 = vpop.f32.mrb[9].mxu0  ;;  %v1195_v46 = vpop.f32.mrb[8].mxu1 }
 0x454   : > { %v1121_v48 = vadd.f32 %v1120_v45, %v1039_v26  ;;  %v1196_v49 = vadd.f32 %v1195_v46, %v1039_v26  ;;  %v1197_v51 = vpop.f32.mrb[9].mxu1 }
 0x455   : > { %v1206_v52 = vmax.f32 %v1119_v44, 0.0  ;;  %v1198_v53 = vadd.f32 %v1197_v51, %v1039_v26 }
 0x456   : > { %v1207_v54 = vmax.f32 %v1121_v48, 0.0  ;;  %v1208_v55 = vmax.f32 %v1196_v49, 0.0  ;;  %v1124_v56 = vpop.f32.mrb[10].mxu0 }
 0x457   : > { %1214 = vst [vmem:[%s278_s15] sm:$0xff] %v1206_v52  ;;  %v1209_v57 = vmax.f32 %v1198_v53, 0.0  ;;  %v1125_v58 = vadd.f32 %v1124_v56, %v1044_v3  ;;  %v1126_v59 = vpop.f32.mrb[11].mxu0  ;;  %v1201_v60 = vpop.f32.mrb[10].mxu1 }
 0x458   : > { %1215 = vst [vmem:[%s278_s15 + $0x8] sm:$0xff] %v1207_v54  ;;  %1216 = vst [vmem:[%s278_s15 + $0x10] sm:$0xff] %v1208_v55  ;;  %v1127_v61 = vadd.f32 %v1126_v59, %v1044_v3  ;;  %v1202_v62 = vadd.f32 %v1201_v60, %v1044_v3  ;;  %v1203_v63 = vpop.f32.mrb[11].mxu1 }
 0x459   : > { %1217 = vst [vmem:[%s278_s15 + $0x18] sm:$0xff] %v1209_v57  ;;  %v1210_v0 = vmax.f32 %v1125_v58, 0.0  ;;  %v1204_v1 = vadd.f32 %v1203_v63, %v1044_v3 }
 0x45a   : > { %v1211_v2 = vmax.f32 %v1127_v61, 0.0  ;;  %v1212_v4 = vmax.f32 %v1202_v62, 0.0 }
 0x45b   : > { %1218 = vst [vmem:[%s278_s15 + $0x20] sm:$0xff] %v1210_v0  ;;  %v1213_v5 = vmax.f32 %v1204_v1, 0.0 }
 0x45c   : > { %1219 = vst [vmem:[%s278_s15 + $0x28] sm:$0xff] %v1211_v2  ;;  %1220 = vst [vmem:[%s278_s15 + $0x30] sm:$0xff] %v1212_v4 }
 0x45d   : > { %1221 = vst [vmem:[%s278_s15 + $0x38] sm:$0xff] %v1213_v5 }
 0x45e PF: > { %s17_s24 = sadd.s32 1, %s1393_s24  }
 0x45f   : > { %p14_p4 = scmp.ge.s32.totalorder %s17_s24, 4  }
 0x461   :  { %16 = sbr.rel (!%p14_p4) target bundleno = 1 (0x1), region = 78 }

</bundles_post_ra>
